<compile_context>
chip_gen: v6e
topology: v6e:2x2x1
jax: 0.10.0
libtpu: 0.0.40
codegen_flags: <defaults>
</compile_context>

<pallas_src>
import jax
import jax.numpy as jnp
from jax.experimental import pallas as pl
from jax.experimental.pallas import tpu as pltpu

LANES = 128
SUBLANES = 8
CHUNK_ROWS = 1024  # inner-chunk size for the large-tile kernel (512 KiB f32)


def _round_up(x, m):
    return ((x + m - 1) // m) * m


def _max_row_tile():
    # v7x: 3.2 TB/s HBM -> 8192-row tiles (4 MiB/operand f32) keep the ~0.35us
    # per-step overhead at ~10%.  v5e/v6e: 4096 is already past diminishing
    # returns (measured ~85% of roofline at 512-1024 rows).
    try:
        kind = jax.devices()[0].device_kind.lower().replace(" ", "")
    except Exception:
        kind = ""
    if "v7" in kind or "tpu7" in kind:
        return 8192
    return 4096


def nmse_loss(y_pred, y_true):
    assert y_pred.shape == y_true.shape, (y_pred.shape, y_true.shape)

    n = y_pred.size
    p_flat = y_pred.reshape(-1)
    t_flat = y_true.reshape(-1)

    # ---- <128-element tail: computed in plain JAX (no full-array pad copy) --
    n_main = (n // LANES) * LANES
    if n_main != n:
        p_tail = p_flat[n_main:].astype(jnp.float32)
        t_tail = t_flat[n_main:].astype(jnp.float32)
        d_tail = p_tail - t_tail
        num_tail = jnp.sum(d_tail * d_tail)
        den_tail = jnp.sum(t_tail * t_tail)
    else:
        num_tail = jnp.float32(0.0)
        den_tail = jnp.float32(0.0)

    if n_main == 0:
        return num_tail / (den_tail + jnp.float32(1e-8))

    rows = n_main // LANES
    p2d = p_flat[:n_main].reshape(rows, LANES)
    t2d = t_flat[:n_main].reshape(rows, LANES)

    # Row alignment for the BlockSpec / sublane packing of the native dtype.
    row_align = max(
        32 // jnp.dtype(p2d.dtype).itemsize,
        32 // jnp.dtype(t2d.dtype).itemsize,
    )
    max_row_tile = _max_row_tile()

    if rows < 1024:
        # Tiny input: one tile; pad to sublane alignment with a few zero rows
        # (<= 31 rows, negligible) so no in-kernel mask is needed.
        rows_p = _round_up(rows, row_align)
        if rows_p != rows:
            p2d = jnp.pad(p2d, ((0, rows_p - rows), (0, 0)))
            t2d = jnp.pad(t2d, ((0, rows_p - rows), (0, 0)))
            rows = rows_p
        row_tile = rows
    elif rows < 2 * CHUNK_ROWS:
        # Split into (at least) 2 tiles so both v7x TensorCores get work.
        row_tile = _round_up(pl.cdiv(rows, 2), row_align)
    else:
        # Large input: chunk-aligned tiles, at least 2 of them.
        row_tile = min(max_row_tile, _round_up(pl.cdiv(rows, 2), CHUNK_ROWS))

    tiles = pl.cdiv(rows, row_tile)
    needs_mask = (rows % row_tile) != 0
    use_chunks = row_tile > CHUNK_ROWS
    if use_chunks:
        assert row_tile % CHUNK_ROWS == 0

    def kernel(p_ref, t_ref, o_ref):
        def tile_partial(p_native, t_native, row0):
            # Cast to f32 in-kernel (inputs stream HBM in native dtype).
            p = p_native.astype(jnp.float32)
            t = t_native.astype(jnp.float32)
            d = p - t
            num = d * d                    # pure VPU work
            den = t * t
            if needs_mask:
                r = jax.lax.broadcasted_iota(jnp.int32, (p.shape[0], 1), 0)
                valid = (row0 + r) < rows
                num = jnp.where(valid, num, 0.0)
                den = jnp.where(valid, den, 0.0)
            g = p.shape[0] // SUBLANES
            # Group-reduce the major axis to one (8,128) slab per quantity
            # (vreg-wise VPU adds; no cross-lane XLU reduce in the hot loop).
            return (num.reshape(g, SUBLANES, LANES).sum(axis=0),
                    den.reshape(g, SUBLANES, LANES).sum(axis=0))

        base = pl.program_id(0) * row_tile

        if not use_chunks:
            num_s, den_s = tile_partial(p_ref[...], t_ref[...], base)
        else:
            n_chunks = row_tile // CHUNK_ROWS

            def body(c, carry):
                num_acc, den_acc = carry
                start = pl.multiple_of(c * CHUNK_ROWS, CHUNK_ROWS)
                ns, ds = tile_partial(
                    p_ref[pl.ds(start, CHUNK_ROWS), :],
                    t_ref[pl.ds(start, CHUNK_ROWS), :],
                    base + start,
                )
                return num_acc + ns, den_acc + ds

            zero = jnp.zeros((SUBLANES, LANES), jnp.float32)
            num_s, den_s = jax.lax.fori_loop(
                0, n_chunks, body, (zero, zero), unroll=True)

        o_ref[0, 0] = num_s
        o_ref[0, 1] = den_s

    partials = pl.pallas_call(
        kernel,
        out_shape=jax.ShapeDtypeStruct((tiles, 2, SUBLANES, LANES), jnp.float32),
        grid_spec=pltpu.PrefetchScalarGridSpec(
            num_scalar_prefetch=0,
            grid=(tiles,),
            in_specs=[
                pl.BlockSpec((row_tile, LANES), lambda i: (i, 0)),
                pl.BlockSpec((row_tile, LANES), lambda i: (i, 0)),
            ],
            out_specs=pl.BlockSpec(
                (1, 2, SUBLANES, LANES), lambda i: (i, 0, 0, 0)
            ),
        ),
        compiler_params=pltpu.CompilerParams(
            # "parallel": every step independent; lets megacore split the grid.
            # (If profiling on v7x shows a single active TC, switch to
            #  pltpu.CORE_PARALLEL.)
            dimension_semantics=("parallel",),
            vmem_limit_bytes=32 * 1024 * 1024,
        ),
    )(p2d, t2d)

    # Single final cross-lane reduction + divide (tiny, plain JAX epilogue).
    num = jnp.sum(partials[:, 0]) + num_tail
    den = jnp.sum(partials[:, 1]) + den_tail
    return num / (den + jnp.float32(1e-8))


if __name__ == "__main__":
    key = jax.random.PRNGKey(0)
    k1, k2, k3, k4 = jax.random.split(key, 4)

    # small NCHW inputs: batch=2, channels=4, spatial=16x16
    y_pred = jax.random.normal(k1, (2, 4, 16, 16), dtype=jnp.float32)
    y_true = jax.random.normal(k2, (2, 4, 16, 16), dtype=jnp.float32)

    loss = nmse_loss(y_pred, y_true)
    jax.block_until_ready(loss)

    ref = jnp.sum((y_pred - y_true) ** 2) / (jnp.sum(y_true ** 2) + 1e-8)
    assert jnp.allclose(loss, ref, rtol=1e-5, atol=1e-6), (loss, ref)

    # ragged case (exercises the 128-aligned prefix + plain-JAX tail path)
    yp2 = jax.random.normal(k3, (3, 7, 11), dtype=jnp.float32)
    yt2 = jax.random.normal(k4, (3, 7, 11), dtype=jnp.float32)
    loss2 = nmse_loss(yp2, yt2)
    jax.block_until_ready(loss2)
    ref2 = jnp.sum((yp2 - yt2) ** 2) / (jnp.sum(yt2 ** 2) + 1e-8)
    assert jnp.allclose(loss2, ref2, rtol=1e-5, atol=1e-6), (loss2, ref2)

    print("KERNEL_OK")
</pallas_src>

<mosaic_0001>
module attributes {stable_mosaic.version = 11 : i64} {
  func.func @kernel(%arg0: i32, %arg1: memref<16x128xf32, #tpu.memory_space<vmem>>, %arg2: memref<16x128xf32, #tpu.memory_space<vmem>>, %arg3: memref<1x2x8x128xf32, #tpu.memory_space<vmem>>) attributes {dimension_semantics = [#tpu.dimension_semantics<parallel>], iteration_bounds = array<i64: 1>, scalar_prefetch = 0 : i64, scratch_operands = 0 : i64, tpu.core_type = #tpu.core_type<tc>, window_params = [{transform_indices = @transform_0, window_bounds = array<i64: 16, 128>}, {transform_indices = @transform_1, window_bounds = array<i64: 16, 128>}, {transform_indices = @transform_2, window_bounds = array<i64: 1, 2, 8, 128>}]} {
    %c0 = arith.constant 0 : index
    %c0_0 = arith.constant 0 : index
    %0 = vector.load %arg1[%c0, %c0_0] : memref<16x128xf32, #tpu.memory_space<vmem>>, vector<16x128xf32>
    %c0_1 = arith.constant 0 : index
    %c0_2 = arith.constant 0 : index
    %1 = vector.load %arg2[%c0_1, %c0_2] : memref<16x128xf32, #tpu.memory_space<vmem>>, vector<16x128xf32>
    %2 = arith.subf %0, %1 : vector<16x128xf32>
    %3 = arith.mulf %2, %2 : vector<16x128xf32>
    %4 = arith.mulf %1, %1 : vector<16x128xf32>
    %5 = vector.shape_cast %3 : vector<16x128xf32> to vector<2x8x128xf32>
    %cst = arith.constant dense<0.000000e+00> : vector<8x128xf32>
    %6 = vector.multi_reduction <add>, %5, %cst [0] : vector<2x8x128xf32> to vector<8x128xf32>
    %7 = vector.shape_cast %4 : vector<16x128xf32> to vector<2x8x128xf32>
    %cst_3 = arith.constant dense<0.000000e+00> : vector<8x128xf32>
    %8 = vector.multi_reduction <add>, %7, %cst_3 [0] : vector<2x8x128xf32> to vector<8x128xf32>
    %c0_4 = arith.constant 0 : index
    %c0_5 = arith.constant 0 : index
    %c0_6 = arith.constant 0 : index
    %c0_7 = arith.constant 0 : index
    %9 = vector.load %arg3[%c0_4, %c0_5, %c0_6, %c0_7] : memref<1x2x8x128xf32, #tpu.memory_space<vmem>>, vector<1x1x8x128xf32>
    %10 = vector.shape_cast %9 : vector<1x1x8x128xf32> to vector<8x128xf32>
    %11 = vector.shape_cast %6 : vector<8x128xf32> to vector<1x1x8x128xf32>
    tpu.vector_store %arg3[%c0_4, %c0_5, %c0_6, %c0_7], %11 {strides = array<i32>} : memref<1x2x8x128xf32, #tpu.memory_space<vmem>>, vector<1x1x8x128xf32>,
    %c0_8 = arith.constant 0 : index
    %c1 = arith.constant 1 : index
    %c0_9 = arith.constant 0 : index
    %c0_10 = arith.constant 0 : index
    %12 = vector.load %arg3[%c0_8, %c1, %c0_9, %c0_10] : memref<1x2x8x128xf32, #tpu.memory_space<vmem>>, vector<1x1x8x128xf32>
    %13 = vector.shape_cast %12 : vector<1x1x8x128xf32> to vector<8x128xf32>
    %14 = vector.shape_cast %8 : vector<8x128xf32> to vector<1x1x8x128xf32>
    tpu.vector_store %arg3[%c0_8, %c1, %c0_9, %c0_10], %14 {strides = array<i32>} : memref<1x2x8x128xf32, #tpu.memory_space<vmem>>, vector<1x1x8x128xf32>,
    return
  }
  func.func @transform_0(%arg0: i32) -> (i32, i32) {
    %c0_i32 = arith.constant 0 : i32
    %c0_i32_0 = arith.constant 0 : i32
    return %arg0, %c0_i32 : i32, i32
  }
  func.func @transform_1(%arg0: i32) -> (i32, i32) {
    %c0_i32 = arith.constant 0 : i32
    %c0_i32_0 = arith.constant 0 : i32
    return %arg0, %c0_i32 : i32, i32
  }
  func.func @transform_2(%arg0: i32) -> (i32, i32, i32, i32) {
    %c0_i32 = arith.constant 0 : i32
    %c0_i32_0 = arith.constant 0 : i32
    %c0_i32_1 = arith.constant 0 : i32
    %c0_i32_2 = arith.constant 0 : i32
    return %arg0, %c0_i32, %c0_i32_0, %c0_i32_1 : i32, i32, i32, i32
  }
}

</mosaic_0001>

<bundles_post_ra>
// kernel: tpu_custom_call.1
= control target key start
LH: loop header
LB: loop body
LE: loop exit
PB: predicated region body
PF: predicated region fallthrough
CT: control target
= control target key end

     0   :  { %7 = vsyncpa [#allocation3], 0  ;;  %s182_s0 = inlined_call_operand.hbm [shape: f32[16,128], index: 0, kind: input, shape index: {}]   ;;  %s183_s1 = inlined_call_operand.hbm [shape: f32[16,128], index: 1, kind: input, shape index: {}]   ;;  %s184_s2 = inlined_call_operand.hbm [shape: f32[1,2,8,128], index: 2, kind: output, shape index: {}]  }
   0x1   :  { %8 = vsyncpa [#allocation6], 0 }
   0x2   :  { %9 = vsyncpa [#allocation4], 0  ;;  %s144_s9 = smov [#allocation2]  }
   0x3   :  { %s15_s10 = sshll.u32 %s144_s9, 4  ;;  %s16_s10 = int_to_ptr.vmem [resolvable:$true] %s15_s10 }
   0x4   :  { %s86_s11 = scalar_lea.vmem %s16_s10, 256  ;;  %p91_p1 = scmp.lt.s32.totalorder %s16_s10, %s16_s10 }
   0x5   :  { %p87_p0 = scmp.ne.s32.totalorder %s16_s10, %s86_s11  ;;  %p92_p2 = scmp.lt.s32.totalorder %s86_s11, %s86_s11 }
   0x7   :  { %p93_p3 = por %p92_p2, %p91_p1 }
   0x9   :  { %p94_p4 = pnand %p93_p3, %p87_p0 }
   0xb   :  { %97 = shalt.err (!%p94_p4)
}
   0xc   :  { %s145_s12 = smov 128   ;;  %s146_s13 = smov 8  }
   0xd   :  { %21 = dma.hbm_to_vmem [thread:$0]  %s182_s0, 256, %s16_s10, [#allocation3], %s145_s12, %s145_s12, %s146_s13  }
   0xe   :  { %s147_s16 = smov [#allocation5]  }
   0xf   :  { %s27_s17 = sshll.u32 %s147_s16, 4  ;;  %s28_s17 = int_to_ptr.vmem [resolvable:$true] %s27_s17 }
  0x10   :  { %s106_s18 = scalar_lea.vmem %s28_s17, 256  ;;  %p111_p6 = scmp.lt.s32.totalorder %s28_s17, %s28_s17 }
  0x11   :  { %p107_p5 = scmp.ne.s32.totalorder %s28_s17, %s106_s18  ;;  %p112_p7 = scmp.lt.s32.totalorder %s106_s18, %s106_s18 }
  0x13   :  { %p113_p8 = por %p112_p7, %p111_p6 }
  0x15   :  { %p114_p9 = pnand %p113_p8, %p107_p5 }
  0x17   :  { %117 = shalt.err (!%p114_p9)
}
  0x18   :  { %33 = dma.hbm_to_vmem [thread:$0]  %s183_s1, 256, %s28_s17, [#allocation6], %s145_s12, %s145_s12, %s146_s13  }
  0x19   :  { %138 = dma.done.wait [#allocation3], 256  }
  0x1a   :  { %139 = vsyncadd [#allocation3], 4294967040 }
  0x1b   :  { %140 = dma.done.wait [#allocation6], 256  }
  0x1c   :  { %141 = vsyncadd [#allocation6], 4294967040  ;;  %v40_v0 = vld [vmem:[#allocation2] sm:$0xff]  ;;  %v41_v1 = vld [vmem:[#allocation2 + $0x8] sm:$0xff]  ;;  %s148_s0 = smov [#allocation7]  }
  0x1d   :  { %v42_v2 = vld [vmem:[#allocation5] sm:$0xff]  ;;  %v43_v3 = vld [vmem:[#allocation5 + $0x8] sm:$0xff]  ;;  %s60_s21 = sshll.u32 %s148_s0, 4  ;;  %s61_s21 = int_to_ptr.vmem [resolvable:$true] %s60_s21 }
  0x1e   :  { %v44_v4 = vsub.f32 %v40_v0, %v42_v2  ;;  %v48_v5 = vmul.f32 %v42_v2, %v42_v2  ;;  %v45_v6 = vsub.f32 %v41_v1, %v43_v3  ;;  %v49_v7 = vmul.f32 %v43_v3, %v43_v3  ;;  %s118_s1 = scalar_lea.vmem %s61_s21, 256  ;;  %p123_p11 = scmp.lt.s32.totalorder %s61_s21, %s61_s21 }
  0x1f   :  { %p119_p10 = scmp.ne.s32.totalorder %s61_s21, %s118_s1  ;;  %p124_p12 = scmp.lt.s32.totalorder %s118_s1, %s118_s1 }
  0x20   :  { %v46_v8 = vmul.f32 %v44_v4, %v44_v4  ;;  %v47_v9 = vmul.f32 %v45_v6, %v45_v6  ;;  %v51_v10 = vadd.f32 %v49_v7, %v48_v5 }
  0x21   :  { %p125_p13 = por %p124_p12, %p123_p11 }
  0x22   :  { %v50_v11 = vadd.f32 %v47_v9, %v46_v8  ;;  %54 = vst [vmem:[#allocation7 + $0x8] sm:$0xff] %v51_v10 }
  0x23   :  { %p126_p0 = pnand %p125_p13, %p119_p10 }
  0x24   :  { %52 = vst [vmem:[#allocation7] sm:$0xff] %v50_v11 }
  0x25   :  { %129 = shalt.err (!%p126_p0)
}
  0x26   :  { %66 = dma.vmem_to_hbm [thread:$0]  %s61_s21, 256, %s184_s2, [#allocation4], %s145_s12, %s145_s12, %s146_s13  }
  0x27   :  { %142 = dma.done.wait [#allocation4], 256  }
  0x28   :  { %143 = vsyncadd [#allocation4], 4294967040 }
  0x29   :  { %70 = vsyncpa [#allocation3], 1 }
  0x2a   :  { %71 = vsyncpa [#allocation6], 1 }
  0x2b   :  { %72 = vsyncpa [#allocation4], 1 }

</bundles_post_ra>
